<compile_context>
chip_gen: v5e
topology: v5e:2x2
jax: 0.10.0
libtpu: 0.0.40
codegen_flags: <defaults>
</compile_context>

<pallas_src>
import functools
import math

import jax
import jax.numpy as jnp
import numpy as np
from jax import lax
from jax.experimental import pallas as pl
from jax.experimental.pallas import tpu as pltpu

GN_GROUPS = 8
GN_EPS = 1e-5
_LANES = 128


def _pack_factor(c, n_items):
  """Items packed per row so the packed channel dim is a multiple of 128."""
  if c % _LANES == 0:
    return 1
  p = _LANES // math.gcd(c, _LANES)
  return p if (n_items % p == 0) else 1


def _choose_tile_rows(n_rows, max_rows):
  cands = [d for d in range(8, min(n_rows, max_rows) + 1, 8) if n_rows % d == 0]
  return max(cands) if cands else n_rows


# --------------------------------------------------------------------------
# Kernel 1: x + [t|v] @ W -> GroupNorm(8) -> SiLU   (two-phase over N-tiles)
# --------------------------------------------------------------------------
def _tv_gn_silu_kernel(x_ref, tv_ref, w_ref, b_ref, gam_ref, bet_ref,
                       grp_ref, grpT_ref, o_ref,
                       sum_ref, sq_ref, scale_ref, shift_ref,
                       *, inv_count):
  phase = pl.program_id(1)
  tile = pl.program_id(2)

  # y = x + [t|v] @ W + b  (recomputed in both phases; cheaper than an HBM
  # round-trip of the un-normalized intermediate).
  y = (x_ref[0]
       + jnp.dot(tv_ref[0], w_ref[...], preferred_element_type=jnp.float32)
       + b_ref[...])                                       # (tile_rows, PC)

  @pl.when(phase == 0)
  def _accumulate():
    @pl.when(tile == 0)
    def _init():
      sum_ref[...] = jnp.zeros_like(sum_ref)
      sq_ref[...] = jnp.zeros_like(sq_ref)

    sum_ref[...] += jnp.sum(y, axis=0, keepdims=True)      # (1, PC)
    sq_ref[...] += jnp.sum(y * y, axis=0, keepdims=True)

  @pl.when(phase == 1)
  def _normalize():
    @pl.when(tile == 0)
    def _stats():
      # fold per-lane sums into per-group stats (once per batch element).
      sg = jnp.dot(sum_ref[...], grp_ref[...],
                   preferred_element_type=jnp.float32)     # (1, G)
      ssg = jnp.dot(sq_ref[...], grp_ref[...],
                    preferred_element_type=jnp.float32)
      mean_g = sg * inv_count
      var_g = ssg * inv_count - mean_g * mean_g
      rstd_g = lax.rsqrt(var_g + GN_EPS)
      mean_l = jnp.dot(mean_g, grpT_ref[...],
                       preferred_element_type=jnp.float32)  # (1, PC)
      rstd_l = jnp.dot(rstd_g, grpT_ref[...],
                       preferred_element_type=jnp.float32)
      scale = gam_ref[...] * rstd_l
      scale_ref[...] = scale
      shift_ref[...] = bet_ref[...] - mean_l * scale

    z = y * scale_ref[...] + shift_ref[...]
    o_ref[0] = z * jax.nn.sigmoid(z)                       # SiLU


# --------------------------------------------------------------------------
# Kernel 2: 3x3x3 Conv3d, stride s, padding=1 (input pre-padded)
#   grid axis 1 = kd tap (reduction); per-depth im2col with K = 9*Q*Cin.
# --------------------------------------------------------------------------
def _conv3_kernel(hp_ref, w_ref, b_ref, o_ref, acc_ref,
                  *, stride, d_out, h_out, w_out, q, cin):
  kd = pl.program_id(1)

  @pl.when(kd == 0)
  def _init():
    acc_ref[...] = jnp.zeros_like(acc_ref)

  wk = w_ref[0]                              # (9*q*cin, q*cout)
  w_grp = w_out // q
  hwq = h_out * w_grp

  @pl.loop(0, d_out)
  def _depth(do):
    d_in = do * stride + kd                  # depth index in padded volume
    slab = hp_ref[0, d_in]                   # (Hp, Wp, cin)
    pieces = []
    for kh in range(3):
      for kw in range(3):
        for p in range(q):
          w0 = kw + p * stride
          pc = lax.slice(
              slab,
              (kh, w0, 0),
              (kh + stride * (h_out - 1) + 1,
               w0 + q * stride * (w_grp - 1) + 1,
               cin),
              (stride, q * stride, 1))       # (h_out, w_grp, cin)
          pieces.append(pc.reshape(hwq, cin))
    patch = jnp.concatenate(pieces, axis=-1)  # (hwq, 9*q*cin)
    acc_ref[do] = acc_ref[do] + jnp.dot(patch, wk,
                                        preferred_element_type=jnp.float32)

  @pl.when(kd == 2)
  def _finish():
    o_ref[0] = acc_ref[...] + b_ref[...]


# --------------------------------------------------------------------------
# Python wrapper
# --------------------------------------------------------------------------
def frustum_tv_block(x, t, v, params, *, stride, max_tile_rows=1024):
  """x: (B, D, H, W, Cx), t: (B, D, H, W, Ct), v: (B, D, H, W, Cv)."""
  B, D, H, W, Cx = x.shape
  Ct = t.shape[-1]
  Cv = v.shape[-1]
  Ctv = Ct + Cv
  Cout = params["conv_w"].shape[-1]
  G = GN_GROUPS
  Cg = Cx // G
  N = D * H * W

  # ---------------- stage 1: projection + GroupNorm + SiLU ---------------
  P = _pack_factor(Cx, N)        # pixels packed per row (lane-dense layout)
  NpR = N // P
  PC = P * Cx
  PCtv = P * Ctv

  x2 = x.reshape(B, NpR, PC)
  tv2 = jnp.concatenate([t, v], axis=-1).reshape(B, NpR, PCtv)

  w_tv = jnp.concatenate([params["t_w"], params["v_w"]], axis=0)  # (Ctv, Cx)
  w_p = jnp.kron(jnp.eye(P, dtype=w_tv.dtype), w_tv)              # (PCtv, PC)
  b_p = jnp.tile(params["t_b"] + params["v_b"], P)[None, :]
  gam_p = jnp.tile(params["gn_gamma"], P)[None, :]
  bet_p = jnp.tile(params["gn_beta"], P)[None, :]

  lane_group = (jnp.arange(PC) % Cx) // Cg
  grp = (lane_group[:, None] == jnp.arange(G)[None, :]).astype(jnp.float32)
  grpT = grp.T

  tile_rows = _choose_tile_rows(NpR, max_tile_rows)
  n_tiles = NpR // tile_rows

  def _const_spec(shape):
    zeros = (0,) * len(shape)
    return pl.BlockSpec(shape, lambda b, p, i: zeros)

  kern1 = functools.partial(_tv_gn_silu_kernel,
                            inv_count=1.0 / float(N * Cg))
  h_packed = pl.pallas_call(
      kern1,
      out_shape=jax.ShapeDtypeStruct((B, NpR, PC), jnp.float32),
      grid_spec=pltpu.PrefetchScalarGridSpec(
          num_scalar_prefetch=0,
          grid=(B, 2, n_tiles),
          in_specs=[
              pl.BlockSpec((1, tile_rows, PC), lambda b, p, i: (b, i, 0)),
              pl.BlockSpec((1, tile_rows, PCtv), lambda b, p, i: (b, i, 0)),
              _const_spec((PCtv, PC)),   # packed [t|v] projection weight
              _const_spec((1, PC)),      # packed projection bias
              _const_spec((1, PC)),      # packed gamma
              _const_spec((1, PC)),      # packed beta
              _const_spec((PC, G)),      # lane -> group one-hot
              _const_spec((G, PC)),      # group -> lane broadcast
          ],
          # phase 0: stay on block (b, 0) (no useful writebacks);
          # phase 1: write block (b, i).
          out_specs=pl.BlockSpec((1, tile_rows, PC),
                                 lambda b, p, i: (b, p * i, 0)),
          scratch_shapes=[
              pltpu.VMEM((1, PC), jnp.float32),   # running sum
              pltpu.VMEM((1, PC), jnp.float32),   # running sum of squares
              pltpu.VMEM((1, PC), jnp.float32),   # per-lane scale
              pltpu.VMEM((1, PC), jnp.float32),   # per-lane shift
          ],
      ),
      compiler_params=pltpu.CompilerParams(
          dimension_semantics=("parallel", "arbitrary", "arbitrary"),
          vmem_limit_bytes=32 * 1024 * 1024),
  )(x2, tv2, w_p, b_p, gam_p, bet_p, grp, grpT)

  h = h_packed.reshape(B, D, H, W, Cx)

  # ---------------- stage 2: 3x3x3 strided conv ---------------------------
  Do = (D - 1) // stride + 1
  Ho = (H - 1) // stride + 1
  Wo = (W - 1) // stride + 1

  q0 = _LANES // math.gcd(Cout, _LANES) if Cout % _LANES else 1
  Q = q0 if (Wo % q0 == 0) else 1            # output pixels packed per row
  hwq = Ho * (Wo // Q)

  # TODO(synk): standalone HBM pad of h; fold halo handling into the kernel.
  hp = jnp.pad(h, ((0, 0), (1, 1), (1, 1), (1, 1), (0, 0)))
  Dp, Hp, Wp = D + 2, H + 2, W + 2

  w5 = params["conv_w"]                                  # (3,3,3,Cx,Cout)
  eye_q = jnp.eye(Q, dtype=w5.dtype)
  w_pk = jnp.einsum("dhwio,pq->dhwpiqo", w5, eye_q)
  w_pk = w_pk.reshape(3, 9 * Q * Cx, Q * Cout)           # per-kd merged taps
  b_pk = jnp.tile(params["conv_b"], Q)[None, :]

  kern2 = functools.partial(_conv3_kernel, stride=stride, d_out=Do,
                            h_out=Ho, w_out=Wo, q=Q, cin=Cx)
  out_packed = pl.pallas_call(
      kern2,
      out_shape=jax.ShapeDtypeStruct((B, Do, hwq, Q * Cout), jnp.float32),
      grid_spec=pltpu.PrefetchScalarGridSpec(
          num_scalar_prefetch=0,
          grid=(B, 3),
          in_specs=[
              pl.BlockSpec((1, Dp, Hp, Wp, Cx),
                           lambda b, kd: (b, 0, 0, 0, 0)),
              pl.BlockSpec((1, 9 * Q * Cx, Q * Cout),
                           lambda b, kd: (kd, 0, 0)),
              pl.BlockSpec((1, Q * Cout), lambda b, kd: (0, 0)),
          ],
          out_specs=pl.BlockSpec((1, Do, hwq, Q * Cout),
                                 lambda b, kd: (b, 0, 0, 0)),
          scratch_shapes=[pltpu.VMEM((Do, hwq, Q * Cout), jnp.float32)],
      ),
      compiler_params=pltpu.CompilerParams(
          dimension_semantics=("parallel", "arbitrary"),
          vmem_limit_bytes=32 * 1024 * 1024),
  )(hp, w_pk, b_pk)

  return out_packed.reshape(B, Do, Ho, Wo, Cout)


# --------------------------------------------------------------------------
# Pure-JAX reference (for correctness check)
# --------------------------------------------------------------------------
def frustum_tv_block_ref(x, t, v, params, *, stride):
  B, D, H, W, Cx = x.shape
  G = GN_GROUPS
  Cg = Cx // G

  y = (x
       + jnp.einsum("bdhwc,co->bdhwo", t, params["t_w"]) + params["t_b"]
       + jnp.einsum("bdhwc,co->bdhwo", v, params["v_w"]) + params["v_b"])

  yr = y.reshape(B, D * H * W, G, Cg)
  mean = jnp.mean(yr, axis=(1, 3), keepdims=True)
  var = jnp.mean((yr - mean) ** 2, axis=(1, 3), keepdims=True)
  yn = (yr - mean) / jnp.sqrt(var + GN_EPS)
  yn = yn.reshape(B, D, H, W, Cx) * params["gn_gamma"] + params["gn_beta"]
  h = yn * jax.nn.sigmoid(yn)

  out = lax.conv_general_dilated(
      h, params["conv_w"],
      window_strides=(stride, stride, stride),
      padding=[(1, 1)] * 3,
      dimension_numbers=("NDHWC", "DHWIO", "NDHWC"))
  return out + params["conv_b"]


# --------------------------------------------------------------------------
if __name__ == "__main__":
  B, D, H, W = 2, 4, 8, 8
  x_dim, t_dim, v_dim, out_dim = 32, 16, 8, 32
  stride = 2

  key = jax.random.PRNGKey(0)
  ks = jax.random.split(key, 12)

  params = {
      "t_w": 0.1 * jax.random.normal(ks[0], (t_dim, x_dim), jnp.float32),
      "t_b": 0.1 * jax.random.normal(ks[1], (x_dim,), jnp.float32),
      "v_w": 0.1 * jax.random.normal(ks[2], (v_dim, x_dim), jnp.float32),
      "v_b": 0.1 * jax.random.normal(ks[3], (x_dim,), jnp.float32),
      "gn_gamma": 1.0 + 0.05 * jax.random.normal(ks[4], (x_dim,), jnp.float32),
      "gn_beta": 0.05 * jax.random.normal(ks[5], (x_dim,), jnp.float32),
      "conv_w": 0.05 * jax.random.normal(ks[6], (3, 3, 3, x_dim, out_dim),
                                         jnp.float32),
      "conv_b": 0.05 * jax.random.normal(ks[7], (out_dim,), jnp.float32),
  }

  x = jax.random.normal(ks[8], (B, D, H, W, x_dim), jnp.float32)
  t = jax.random.normal(ks[9], (B, D, H, W, t_dim), jnp.float32)
  v = jax.random.normal(ks[10], (B, D, H, W, v_dim), jnp.float32)

  # small tile limit so the demo exercises multi-tile two-phase GroupNorm.
  out = frustum_tv_block(x, t, v, params, stride=stride, max_tile_rows=16)
  out = jax.block_until_ready(out)

  ref = jax.block_until_ready(
      frustum_tv_block_ref(x, t, v, params, stride=stride))

  np.testing.assert_allclose(np.asarray(out), np.asarray(ref),
                             rtol=1e-4, atol=1e-4)
  print("KERNEL_OK")
</pallas_src>

<mosaic_0001>
module attributes {stable_mosaic.version = 11 : i64} {
  func.func @_tv_gn_silu_kernel(%arg0: i32, %arg1: i32, %arg2: i32, %arg3: memref<1x16x128xf32, #tpu.memory_space<vmem>>, %arg4: memref<1x16x96xf32, #tpu.memory_space<vmem>>, %arg5: memref<96x128xf32, #tpu.memory_space<vmem>>, %arg6: memref<1x128xf32, #tpu.memory_space<vmem>>, %arg7: memref<1x128xf32, #tpu.memory_space<vmem>>, %arg8: memref<1x128xf32, #tpu.memory_space<vmem>>, %arg9: memref<128x8xf32, #tpu.memory_space<vmem>>, %arg10: memref<8x128xf32, #tpu.memory_space<vmem>>, %arg11: memref<1x16x128xf32, #tpu.memory_space<vmem>>, %arg12: memref<1x128xf32, #tpu.memory_space<vmem>>, %arg13: memref<1x128xf32, #tpu.memory_space<vmem>>, %arg14: memref<1x128xf32, #tpu.memory_space<vmem>>, %arg15: memref<1x128xf32, #tpu.memory_space<vmem>>) attributes {dimension_semantics = [#tpu.dimension_semantics<parallel>, #tpu.dimension_semantics<arbitrary>, #tpu.dimension_semantics<arbitrary>], iteration_bounds = array<i64: 2, 2, 4>, scalar_prefetch = 0 : i64, scratch_operands = 4 : i64, tpu.core_type = #tpu.core_type<tc>, window_params = [{transform_indices = @transform_0, window_bounds = array<i64: 1, 16, 128>}, {transform_indices = @transform_1, window_bounds = array<i64: 1, 16, 96>}, {pipeline_mode = #tpu.pipeline_mode<synchronous>, transform_indices = @transform_2, window_bounds = array<i64: 96, 128>}, {pipeline_mode = #tpu.pipeline_mode<synchronous>, transform_indices = @transform_3, window_bounds = array<i64: 1, 128>}, {pipeline_mode = #tpu.pipeline_mode<synchronous>, transform_indices = @transform_4, window_bounds = array<i64: 1, 128>}, {pipeline_mode = #tpu.pipeline_mode<synchronous>, transform_indices = @transform_5, window_bounds = array<i64: 1, 128>}, {pipeline_mode = #tpu.pipeline_mode<synchronous>, transform_indices = @transform_6, window_bounds = array<i64: 128, 8>}, {pipeline_mode = #tpu.pipeline_mode<synchronous>, transform_indices = @transform_7, window_bounds = array<i64: 8, 128>}, {transform_indices = @transform_8, window_bounds = array<i64: 1, 16, 128>}]} {
    %c0 = arith.constant 0 : index
    %c0_0 = arith.constant 0 : index
    %c0_1 = arith.constant 0 : index
    %0 = vector.load %arg3[%c0, %c0_0, %c0_1] : memref<1x16x128xf32, #tpu.memory_space<vmem>>, vector<1x16x128xf32>
    %1 = vector.shape_cast %0 : vector<1x16x128xf32> to vector<16x128xf32>
    %c0_2 = arith.constant 0 : index
    %c0_3 = arith.constant 0 : index
    %c0_4 = arith.constant 0 : index
    %2 = vector.load %arg4[%c0_2, %c0_3, %c0_4] : memref<1x16x96xf32, #tpu.memory_space<vmem>>, vector<1x16x96xf32>
    %3 = vector.shape_cast %2 : vector<1x16x96xf32> to vector<16x96xf32>
    %c0_5 = arith.constant 0 : index
    %c0_6 = arith.constant 0 : index
    %4 = vector.load %arg5[%c0_5, %c0_6] : memref<96x128xf32, #tpu.memory_space<vmem>>, vector<96x128xf32>
    %cst = arith.constant dense<0.000000e+00> : vector<16x128xf32>
    %5 = tpu.matmul %3, %4, %cst {dimension_numbers = #tpu.dot_dimension_numbers<[1], [0], [0], [1], [0, 0, 1, 1], [], []>} : vector<16x96xf32>, vector<96x128xf32>, vector<16x128xf32> -> vector<16x128xf32>
    %6 = arith.addf %1, %5 : vector<16x128xf32>
    %c0_7 = arith.constant 0 : index
    %c0_8 = arith.constant 0 : index
    %7 = vector.load %arg6[%c0_7, %c0_8] : memref<1x128xf32, #tpu.memory_space<vmem>>, vector<1x128xf32>
    %8 = vector.broadcast %7 : vector<1x128xf32> to vector<16x128xf32>
    %9 = arith.addf %6, %8 : vector<16x128xf32>
    %c0_i32 = arith.constant 0 : i32
    %10 = arith.cmpi eq, %arg1, %c0_i32 : i32
    %11 = arith.extui %10 : i1 to i32
    %c0_i32_9 = arith.constant 0 : i32
    %12 = arith.cmpi ne, %11, %c0_i32_9 : i32
    scf.if %12 {
      %c0_i32_11 = arith.constant 0 : i32
      %16 = arith.cmpi eq, %arg2, %c0_i32_11 : i32
      %17 = arith.extui %16 : i1 to i32
      %c0_i32_12 = arith.constant 0 : i32
      %18 = arith.cmpi ne, %17, %c0_i32_12 : i32
      scf.if %18 {
        %cst_23 = arith.constant 0.000000e+00 : f32
        %30 = vector.broadcast %cst_23 : f32 to vector<1x128xf32>
        %c0_24 = arith.constant 0 : index
        %c0_25 = arith.constant 0 : index
        %31 = vector.load %arg12[%c0_24, %c0_25] : memref<1x128xf32, #tpu.memory_space<vmem>>, vector<1x128xf32>
        tpu.vector_store %arg12[%c0_24, %c0_25], %30 {strides = array<i32>} : memref<1x128xf32, #tpu.memory_space<vmem>>, vector<1x128xf32>,
        %cst_26 = arith.constant 0.000000e+00 : f32
        %32 = vector.broadcast %cst_26 : f32 to vector<1x128xf32>
        %c0_27 = arith.constant 0 : index
        %c0_28 = arith.constant 0 : index
        %33 = vector.load %arg13[%c0_27, %c0_28] : memref<1x128xf32, #tpu.memory_space<vmem>>, vector<1x128xf32>
        tpu.vector_store %arg13[%c0_27, %c0_28], %32 {strides = array<i32>} : memref<1x128xf32, #tpu.memory_space<vmem>>, vector<1x128xf32>,
      } else {
      }
      %c0_13 = arith.constant 0 : index
      %c0_14 = arith.constant 0 : index
      %19 = vector.load %arg12[%c0_13, %c0_14] : memref<1x128xf32, #tpu.memory_space<vmem>>, vector<1x128xf32>
      %cst_15 = arith.constant dense<0.000000e+00> : vector<128xf32>
      %20 = vector.multi_reduction <add>, %9, %cst_15 [0] : vector<16x128xf32> to vector<128xf32>
      %21 = vector.shape_cast %20 : vector<128xf32> to vector<1x128xf32>
      %22 = arith.addf %19, %21 : vector<1x128xf32>
      %c0_16 = arith.constant 0 : index
      %c0_17 = arith.constant 0 : index
      %23 = vector.load %arg12[%c0_16, %c0_17] : memref<1x128xf32, #tpu.memory_space<vmem>>, vector<1x128xf32>
      tpu.vector_store %arg12[%c0_16, %c0_17], %22 {strides = array<i32>} : memref<1x128xf32, #tpu.memory_space<vmem>>, vector<1x128xf32>,
      %c0_18 = arith.constant 0 : index
      %c0_19 = arith.constant 0 : index
      %24 = vector.load %arg13[%c0_18, %c0_19] : memref<1x128xf32, #tpu.memory_space<vmem>>, vector<1x128xf32>
      %25 = arith.mulf %9, %9 : vector<16x128xf32>
      %cst_20 = arith.constant dense<0.000000e+00> : vector<128xf32>
      %26 = vector.multi_reduction <add>, %25, %cst_20 [0] : vector<16x128xf32> to vector<128xf32>
      %27 = vector.shape_cast %26 : vector<128xf32> to vector<1x128xf32>
      %28 = arith.addf %24, %27 : vector<1x128xf32>
      %c0_21 = arith.constant 0 : index
      %c0_22 = arith.constant 0 : index
      %29 = vector.load %arg13[%c0_21, %c0_22] : memref<1x128xf32, #tpu.memory_space<vmem>>, vector<1x128xf32>
      tpu.vector_store %arg13[%c0_21, %c0_22], %28 {strides = array<i32>} : memref<1x128xf32, #tpu.memory_space<vmem>>, vector<1x128xf32>,
    } else {
    }
    %c1_i32 = arith.constant 1 : i32
    %13 = arith.cmpi eq, %arg1, %c1_i32 : i32
    %14 = arith.extui %13 : i1 to i32
    %c0_i32_10 = arith.constant 0 : i32
    %15 = arith.cmpi ne, %14, %c0_i32_10 : i32
    scf.if %15 {
      %c0_i32_11 = arith.constant 0 : i32
      %16 = arith.cmpi eq, %arg2, %c0_i32_11 : i32
      %17 = arith.extui %16 : i1 to i32
      %c0_i32_12 = arith.constant 0 : i32
      %18 = arith.cmpi ne, %17, %c0_i32_12 : i32
      scf.if %18 {
        %c0_21 = arith.constant 0 : index
        %c0_22 = arith.constant 0 : index
        %34 = vector.load %arg12[%c0_21, %c0_22] : memref<1x128xf32, #tpu.memory_space<vmem>>, vector<1x128xf32>
        %c0_23 = arith.constant 0 : index
        %c0_24 = arith.constant 0 : index
        %35 = vector.load %arg9[%c0_23, %c0_24] : memref<128x8xf32, #tpu.memory_space<vmem>>, vector<128x8xf32>
        %cst_25 = arith.constant dense<0.000000e+00> : vector<1x8xf32>
        %36 = tpu.matmul %34, %35, %cst_25 {dimension_numbers = #tpu.dot_dimension_numbers<[1], [0], [0], [1], [0, 0, 1, 1], [], []>} : vector<1x128xf32>, vector<128x8xf32>, vector<1x8xf32> -> vector<1x8xf32>
        %c0_26 = arith.constant 0 : index
        %c0_27 = arith.constant 0 : index
        %37 = vector.load %arg13[%c0_26, %c0_27] : memref<1x128xf32, #tpu.memory_space<vmem>>, vector<1x128xf32>
        %c0_28 = arith.constant 0 : index
        %c0_29 = arith.constant 0 : index
        %38 = vector.load %arg9[%c0_28, %c0_29] : memref<128x8xf32, #tpu.memory_space<vmem>>, vector<128x8xf32>
        %cst_30 = arith.constant dense<0.000000e+00> : vector<1x8xf32>
        %39 = tpu.matmul %37, %38, %cst_30 {dimension_numbers = #tpu.dot_dimension_numbers<[1], [0], [0], [1], [0, 0, 1, 1], [], []>} : vector<1x128xf32>, vector<128x8xf32>, vector<1x8xf32> -> vector<1x8xf32>
        %cst_31 = arith.constant 9.765625E-4 : f32
        %40 = vector.broadcast %cst_31 : f32 to vector<1x8xf32>
        %41 = arith.mulf %36, %40 : vector<1x8xf32>
        %cst_32 = arith.constant 9.765625E-4 : f32
        %42 = vector.broadcast %cst_32 : f32 to vector<1x8xf32>
        %43 = arith.mulf %39, %42 : vector<1x8xf32>
        %44 = arith.mulf %41, %41 : vector<1x8xf32>
        %45 = arith.subf %43, %44 : vector<1x8xf32>
        %cst_33 = arith.constant 9.99999974E-6 : f32
        %46 = vector.broadcast %cst_33 : f32 to vector<1x8xf32>
        %47 = arith.addf %45, %46 : vector<1x8xf32>
        %48 = math.rsqrt %47 : vector<1x8xf32>
        %c0_34 = arith.constant 0 : index
        %c0_35 = arith.constant 0 : index
        %49 = vector.load %arg10[%c0_34, %c0_35] : memref<8x128xf32, #tpu.memory_space<vmem>>, vector<8x128xf32>
        %cst_36 = arith.constant dense<0.000000e+00> : vector<1x128xf32>
        %50 = tpu.matmul %41, %49, %cst_36 {dimension_numbers = #tpu.dot_dimension_numbers<[1], [0], [0], [1], [0, 0, 1, 1], [], []>} : vector<1x8xf32>, vector<8x128xf32>, vector<1x128xf32> -> vector<1x128xf32>
        %c0_37 = arith.constant 0 : index
        %c0_38 = arith.constant 0 : index
        %51 = vector.load %arg10[%c0_37, %c0_38] : memref<8x128xf32, #tpu.memory_space<vmem>>, vector<8x128xf32>
        %cst_39 = arith.constant dense<0.000000e+00> : vector<1x128xf32>
        %52 = tpu.matmul %48, %51, %cst_39 {dimension_numbers = #tpu.dot_dimension_numbers<[1], [0], [0], [1], [0, 0, 1, 1], [], []>} : vector<1x8xf32>, vector<8x128xf32>, vector<1x128xf32> -> vector<1x128xf32>
        %c0_40 = arith.constant 0 : index
        %c0_41 = arith.constant 0 : index
        %53 = vector.load %arg7[%c0_40, %c0_41] : memref<1x128xf32, #tpu.memory_space<vmem>>, vector<1x128xf32>
        %54 = arith.mulf %53, %52 : vector<1x128xf32>
        %c0_42 = arith.constant 0 : index
        %c0_43 = arith.constant 0 : index
        %55 = vector.load %arg14[%c0_42, %c0_43] : memref<1x128xf32, #tpu.memory_space<vmem>>, vector<1x128xf32>
        tpu.vector_store %arg14[%c0_42, %c0_43], %54 {strides = array<i32>} : memref<1x128xf32, #tpu.memory_space<vmem>>, vector<1x128xf32>,
        %c0_44 = arith.constant 0 : index
        %c0_45 = arith.constant 0 : index
        %56 = vector.load %arg8[%c0_44, %c0_45] : memref<1x128xf32, #tpu.memory_space<vmem>>, vector<1x128xf32>
        %57 = arith.mulf %50, %54 : vector<1x128xf32>
        %58 = arith.subf %56, %57 : vector<1x128xf32>
        %c0_46 = arith.constant 0 : index
        %c0_47 = arith.constant 0 : index
        %59 = vector.load %arg15[%c0_46, %c0_47] : memref<1x128xf32, #tpu.memory_space<vmem>>, vector<1x128xf32>
        tpu.vector_store %arg15[%c0_46, %c0_47], %58 {strides = array<i32>} : memref<1x128xf32, #tpu.memory_space<vmem>>, vector<1x128xf32>,
      } else {
      }
      %c0_13 = arith.constant 0 : index
      %c0_14 = arith.constant 0 : index
      %19 = vector.load %arg14[%c0_13, %c0_14] : memref<1x128xf32, #tpu.memory_space<vmem>>, vector<1x128xf32>
      %20 = vector.broadcast %19 : vector<1x128xf32> to vector<16x128xf32>
      %21 = arith.mulf %9, %20 : vector<16x128xf32>
      %c0_15 = arith.constant 0 : index
      %c0_16 = arith.constant 0 : index
      %22 = vector.load %arg15[%c0_15, %c0_16] : memref<1x128xf32, #tpu.memory_space<vmem>>, vector<1x128xf32>
      %23 = vector.broadcast %22 : vector<1x128xf32> to vector<16x128xf32>
      %24 = arith.addf %21, %23 : vector<16x128xf32>
      %25 = arith.negf %24 : vector<16x128xf32>
      %26 = math.exp %25 : vector<16x128xf32>
      %cst_17 = arith.constant 1.000000e+00 : f32
      %27 = vector.broadcast %cst_17 : f32 to vector<16x128xf32>
      %28 = arith.addf %27, %26 : vector<16x128xf32>
      %29 = arith.divf %27, %28 : vector<16x128xf32>
      %30 = arith.mulf %24, %29 : vector<16x128xf32>
      %c0_18 = arith.constant 0 : index
      %c0_19 = arith.constant 0 : index
      %c0_20 = arith.constant 0 : index
      %31 = vector.load %arg11[%c0_18, %c0_19, %c0_20] : memref<1x16x128xf32, #tpu.memory_space<vmem>>, vector<1x16x128xf32>
      %32 = vector.shape_cast %31 : vector<1x16x128xf32> to vector<16x128xf32>
      %33 = vector.shape_cast %30 : vector<16x128xf32> to vector<1x16x128xf32>
      tpu.vector_store %arg11[%c0_18, %c0_19, %c0_20], %33 {strides = array<i32>} : memref<1x16x128xf32, #tpu.memory_space<vmem>>, vector<1x16x128xf32>,
    } else {
    }
    return
  }
  func.func @transform_0(%arg0: i32, %arg1: i32, %arg2: i32) -> (i32, i32, i32) {
    %c0_i32 = arith.constant 0 : i32
    %c0_i32_0 = arith.constant 0 : i32
    return %arg0, %arg2, %c0_i32 : i32, i32, i32
  }
  func.func @transform_1(%arg0: i32, %arg1: i32, %arg2: i32) -> (i32, i32, i32) {
    %c0_i32 = arith.constant 0 : i32
    %c0_i32_0 = arith.constant 0 : i32
    return %arg0, %arg2, %c0_i32 : i32, i32, i32
  }
  func.func @transform_2(%arg0: i32, %arg1: i32, %arg2: i32) -> (i32, i32) {
    %c0_i32 = arith.constant 0 : i32
    %c0_i32_0 = arith.constant 0 : i32
    %c0_i32_1 = arith.constant 0 : i32
    return %c0_i32, %c0_i32_0 : i32, i32
  }
  func.func @transform_3(%arg0: i32, %arg1: i32, %arg2: i32) -> (i32, i32) {
    %c0_i32 = arith.constant 0 : i32
    %c0_i32_0 = arith.constant 0 : i32
    %c0_i32_1 = arith.constant 0 : i32
    return %c0_i32, %c0_i32_0 : i32, i32
  }
  func.func @transform_4(%arg0: i32, %arg1: i32, %arg2: i32) -> (i32, i32) {
    %c0_i32 = arith.constant 0 : i32
    %c0_i32_0 = arith.constant 0 : i32
    %c0_i32_1 = arith.constant 0 : i32
    return %c0_i32, %c0_i32_0 : i32, i32
  }
  func.func @transform_5(%arg0: i32, %arg1: i32, %arg2: i32) -> (i32, i32) {
    %c0_i32 = arith.constant 0 : i32
    %c0_i32_0 = arith.constant 0 : i32
    %c0_i32_1 = arith.constant 0 : i32
    return %c0_i32, %c0_i32_0 : i32, i32
  }
  func.func @transform_6(%arg0: i32, %arg1: i32, %arg2: i32) -> (i32, i32) {
    %c0_i32 = arith.constant 0 : i32
    %c0_i32_0 = arith.constant 0 : i32
    %c0_i32_1 = arith.constant 0 : i32
    return %c0_i32, %c0_i32_0 : i32, i32
  }
  func.func @transform_7(%arg0: i32, %arg1: i32, %arg2: i32) -> (i32, i32) {
    %c0_i32 = arith.constant 0 : i32
    %c0_i32_0 = arith.constant 0 : i32
    %c0_i32_1 = arith.constant 0 : i32
    return %c0_i32, %c0_i32_0 : i32, i32
  }
  func.func @transform_8(%arg0: i32, %arg1: i32, %arg2: i32) -> (i32, i32, i32) {
    %0 = arith.muli %arg1, %arg2 : i32
    %c0_i32 = arith.constant 0 : i32
    %c0_i32_0 = arith.constant 0 : i32
    return %arg0, %0, %c0_i32 : i32, i32, i32
  }
}

</mosaic_0001>

<bundles_post_ra>
// kernel: tpu_custom_call.1
= control target key start
LH: loop header
LB: loop body
LE: loop exit
PB: predicated region body
PF: predicated region fallthrough
CT: control target
= control target key end

     0   :  { %s1606_s0 = inlined_call_operand.vmem [shape: f32[2,64,128], index: 0, kind: input, shape index: {}]   ;;  %s1607_s1 = inlined_call_operand.hbm [shape: f32[2,64,96], index: 1, kind: input, shape index: {}]   ;;  %s1608_s2 = inlined_call_operand.hbm [shape: f32[96,128], index: 2, kind: input, shape index: {}]   ;;  %s1609_s3 = inlined_call_operand.vmem [shape: f32[1,128], index: 3, kind: input, shape index: {}]   ;;  %s1610_s4 = inlined_call_operand.vmem [shape: f32[1,128], index: 4, kind: input, shape index: {}]   ;;  %s1611_s5 = inlined_call_operand.vmem [shape: f32[1,128], index: 5, kind: input, shape index: {}]   ;;  %s1612_s6 = inlined_call_operand.vmem [shape: f32[128,8], index: 6, kind: input, shape index: {}]   ;;  %s1613_s7 = inlined_call_operand.vmem [shape: f32[8,128], index: 7, kind: input, shape index: {}]   ;;  %s1614_s8 = inlined_call_operand.hbm [shape: f32[2,64,128], index: 8, kind: output, shape index: {}]  }
   0x1   :  { %1630 = sst [smem:[#allocation26_spill]] %s1606_s0 }
   0x2   :  { %1631 = sst [smem:[#allocation27_spill]] %s1607_s1 }
   0x3   :  { %1632 = sst [smem:[#allocation28_spill]] %s1608_s2 }
   0x4   :  { %1633 = sst [smem:[#allocation29_spill]] %s1609_s3 }
   0x5   :  { %1634 = sst [smem:[#allocation30_spill]] %s1610_s4 }
   0x6   :  { %1635 = sst [smem:[#allocation31_spill]] %s1611_s5 }
   0x7   :  { %1636 = sst [smem:[#allocation32_spill]] %s1612_s6 }
   0x8   :  { %1637 = sst [smem:[#allocation33_spill]] %s1613_s7 }
   0x9   :  { %1638 = sst [smem:[#allocation34_spill]] %s1614_s8 }
   0xa   :  { %13 = vsyncpa [#allocation7], 0 }
   0xb   :  { %15 = vsyncpa [#allocation7 + $0x1], 0 }
   0xc   :  { %16 = vsyncpa [#allocation10], 0 }
   0xd   :  { %17 = vsyncpa [#allocation8], 0 }
   0xe   :  { %19 = vsyncpa [#allocation8 + $0x1], 0  ;;  %s1274_s27 = smov 0   ;;  %s1276_s28 = smov 0  }
   0xf   :  { %s1278_s29 = smov 0   ;;  %s1280_s30 = smov 0  }
  0x10   :  { %s1282_s9 = smov 0   ;;  %s1284_s10 = smov 0  }
  0x11   :  { %s1286_s11 = smov 0   ;;  %s1288_s12 = smov 0  }
  0x12   :  { %s1290_s13 = smov 0   ;;  %s1292_s14 = smov 0  }
  0x13   :  { %s1294_s15 = smov 0   ;;  %s1296_s16 = smov 0  }
  0x14   :  { %s1298_s17 = smov 0  }
  0x15 LB: > { %1639 = sst [smem:[#allocation15_spill]] %s1173_s27  ;;  %s828_s18 = sadd.s32 4294967295, %s1221_s17   ;;  %s1221_s17 = sphi %s1298_s17, %s25_s17   ;;  %s1217_s16 = sphi %s1296_s16, %s1697_s16   ;;  %s1213_s15 = sphi %s1294_s15, %s1687_s15   ;;  %s1209_s14 = sphi %s1292_s14, %s1696_s14   ;;  %s1205_s13 = sphi %s1290_s13, %s1695_s13   ;;  %s1201_s12 = sphi %s1288_s12, %s1685_s12   ;;  %s1197_s11 = sphi %s1286_s11, %s1694_s11   ;;  %s1193_s10 = sphi %s1284_s10, %s1693_s10   ;;  %s1189_s9 = sphi %s1282_s9, %s1692_s9   ;;  %s1185_s30 = sphi %s1280_s30, %s1691_s30   ;;  %s1181_s29 = sphi %s1278_s29, %s1690_s29   ;;  %s1177_s28 = sphi %s1276_s28, %s1689_s28   ;;  %s1173_s27 = sphi %s1274_s27, %s1684_s27  }
  0x16   : > { %1640 = sst [smem:[#allocation16_spill]] %s1177_s28  ;;  %s829_s19 = sadd.s32 4294967294, %s1221_s17  }
  0x17   : > { %1641 = sst [smem:[#allocation17_spill]] %s1197_s11  ;;  %p94_p0 = scmp.ne.s32.totalorder %s1189_s9, %s1185_s30 }
  0x18   : > { %1642 = sst [smem:[#allocation18_spill]] %s1201_s12  ;;  %p1340_p1 = scmp.eq.s32.totalorder %s828_s18, 0 }
  0x19   : > { %1643 = sst [smem:[#allocation19_spill]] %s1205_s13  ;;  %p247_p2 = scmp.ne.s32.totalorder %s1181_s29, %s1177_s28 }
  0x1a   : > { %1644 = sst [smem:[#allocation20_spill]] %s1213_s15  ;;  %p248_p3 = scmp.eq.s32.totalorder %s828_s18, 15 }
  0x1b   : > { %p1348_p4 = por %p1340_p1, %p94_p0  ;;  %p253_p5 = scmp.ne.s32.totalorder %s1177_s28, %s1173_s27 }
  0x1c   : > { %p1354_p6 = por %p248_p3, %p247_p2  ;;  %p254_p7 = scmp.eq.s32.totalorder %s829_s19, 15 }
  0x1d   : > { %p830_p8 = scmp.ge.s32.totalorder %s1221_s17, 1  ;;  %p261_p9 = scmp.lt.s32.totalorder %s1221_s17, 17 }
  0x1e   : > { %s1647_s22 = scalar_select %p1354_p6, 1, 0 }
  0x1f   : > { %p1360_p10 = por %p254_p7, %p253_p5  ;;  %p1364_p11 = pnand %p830_p8, %p261_p9 }
  0x20   : > { %1648 = sst [smem:[#allocation21_spill]] %s1647_s22  ;;  %s1223_s18 = smov [#allocation9]  }
  0x21   : > { %s1649_s23 = scalar_select %p1360_p10, 1, 0 }
  0x22   : > { %s1652_s2 = sld [smem:[#allocation28_spill]]  ;;  %p880_p12 = pneg %p1364_p11 }
  0x23   : > { %1650 = sst [smem:[#allocation22_spill]] %s1649_s23  ;;  %s274_s19 = sshll.u32 %s1223_s18, 4  ;;  %s275_s19 = int_to_ptr.vmem [resolvable:$true] %s274_s19 }
  0x24   : > { %p881_p13 = pnand %p880_p12, %p1340_p1  ;;  %s1618_s23 = smov 128  }
  0x25   : > { %s1619_s27 = smov 8   ;;  %s37_s25 = sadd.s32 1, %s1209_s14 }
  0x26   : > { %p38_p0 = scmp.ge.s32.totalorder %s37_s25, 4  ;;  %s40_s26 = sadd.s32 1, %s1213_s15 }
  0x27   : > { %p88_p2 = scmp.ne.s32.totalorder %s1193_s10, %s1189_s9  ;;  %s81_s18 = sadd.s32 1, %s1193_s10 }
  0x28   : > { %s272_s30 = sshll.u32 %s1652_s2, 4  ;;  %s44_s2 = sadd.s32 1, %s1217_s16  ;;  %s273_s30 = int_to_ptr.hbm [resolvable:$true] %s272_s30 }
  0x29   : > { %883 = dma.hbm_to_vmem [thread:$0]  (!%p881_p13), %s273_s30, 1536, %s275_s19, [#allocation10], %s1618_s23, %s1618_s23, %s1619_s27  }
  0x2a   : > { %s1699_s25 = smov (%p38_p0, %s37_s25), 0  ;;  %s1701_s26 = smov (!%p38_p0, %s40_s26), %s1213_s15 }
  0x2b   : > { %1653 = sst [smem:[#allocation23_spill]] %s1699_s25  ;;  %p89_p3 = scmp.eq.s32.totalorder %s1221_s17, 0 }
  0x2c   : > { %p42_p5 = scmp.ge.s32.totalorder %s1701_s26, 2  ;;  %s77_s8 = ssub.s32 %s1209_s14, %s1699_s25 }
  0x2d   : > { %p1390_p7 = por %p89_p3, %p88_p2  ;;  %s230_s19 = smul.u32 %s1209_s14, %s1213_s15 }
  0x2e   : > { %s1703_s26 = smov (%p42_p5, %s1701_s26), 0  ;;  %s1705_s2 = smov (!%p42_p5, %s44_s2), %s1217_s16 }
  0x2f   : > { %1655 = sst [smem:[#allocation24_spill]] %s1703_s26  ;;  %s231_s23 = smul.u32 %s1703_s26, %s1699_s25 }
  0x30   : > { %s237_s27 = sadd.s32 1, %s1181_s29  ;;  %p46_p8 = scmp.ge.s32.totalorder %s1705_s2, 2 }
  0x31   : > { %s316_s22 = sand.u32 1, %s1193_s10   ;;  %s233_s5 = ssub.s32 %s230_s19, %s231_s23 }
  0x32   : > { %p893_p9 = scmp.lt.s32.totalorder %s1221_s17, 16  ;;  %s1707_s2 = smov (%p46_p8, %s1705_s2), 0 }
  0x33   : > { %1656 = sst [smem:[#allocation25_spill]] %s1707_s2  ;;  %s833_s4 = sshll.u32 %s316_s22, 4 }
  0x34   : > { %s834_s15 = sshll.u32 %s1209_s14, 1  ;;  %s76_s7 = ssub.s32 %s1217_s16, %s1707_s2 }
  0x35   : > { %s78_s6 = sor.u32 %s77_s8, %s76_s7  ;;  %s234_s12 = sor.u32 %s233_s5, %s76_s7 }
  0x36   : > { %p79_p12 = scmp.eq.s32.totalorder %s78_s6, 0  ;;  %p235_p13 = scmp.eq.s32.totalorder %s234_s12, 0 }
  0x37   : > { %s835_s26 = sshll.u32 %s1217_s16, 3  ;;  %s320_s25 = scalar_lea.vmem [#allocation6], %s833_s4 }
  0x38   : > { %s330_s3 = sshll.u32 %s320_s25, 4  ;;  %s325_s23 = sadd.s32 %s835_s26, %s834_s15  ;;  %s331_s3 = int_to_ptr.vmem [resolvable:$true] %s330_s3 }
  0x39   : > { %s1411_s0 = scalar_select %p79_p12, %s1193_s10, %s81_s18  }
  0x3a   : > { %s1414_s13 = scalar_select %p235_p13, %s1181_s29, %s237_s27  }
  0x3b   : > { %s836_s19 = sshll.u32 %s325_s23, 3  ;;  %p885_p0 = pnand %p893_p9, %p1390_p7 }
  0x3c   : > { %s1657_s1 = sld [smem:[#allocation27_spill]]  ;;  %s317_s6 = scalar_lea.sflag [#allocation7], %s316_s22 }
  0x3d   : > { %s1658_s7 = smov 8   ;;  %s1659_s4 = smov 128  }
  0x3e   : > { %s344_s8 = sand.u32 (!%p1364_p11), 1, %s1189_s9  }
  0x3f   : > { %s1429_s27 = sshll.u32 (!%p1364_p11), %s344_s8, 4  ;;  %s345_s12 = scalar_lea.sflag (!%p1364_p11), [#allocation7], %s344_s8 }
  0x40   : > { %342 = sbr.rel (%p1364_p11) target bundleno = 663 (0x297), region = 52  ;;  %s348_s28 = scalar_lea.vmem (!%p1364_p11), [#allocation6], %s1429_s27 }
  0x42   : > { %s327_s2 = scalar_lea.hbm %s1657_s1, %s836_s19 }
  0x43   : > { %s328_s5 = sshll.u32 %s327_s2, 4  ;;  %s329_s5 = int_to_ptr.hbm [resolvable:$true] %s328_s5 }
  0x44   : > { %887 = dma.hbm_to_vmem [thread:$0]  (!%p885_p0), %s329_s5, 256, %s331_s3, %s317_s6, %s1659_s4, %s1659_s4, %s1658_s7  }
  0x45   : > { %1160 = dma.done.wait (%p1348_p4), %s345_s12, 256  }
  0x46   : > { %1162 = vsyncadd (%p1348_p4), %s345_s12, 4294967040 }
  0x47   : > { %1164 = dma.done.wait (%p1340_p1), [#allocation10], 1536  }
  0x48   : > { %1166 = vsyncadd (%p1340_p1), [#allocation10], 4294965760  ;;  %s1660_s2 = sld [smem:[#allocation16_spill]]  ;;  %v424_v0 = vld [vmem:[#allocation9 + $0x58] sm:$0xff]  ;;  %v423_v1 = vld [vmem:[#allocation9 + $0x50] sm:$0xff]  ;;  %vm425_vm0 = vcmask 785408  }
  0x49   : > { %436 = vmatpush.msra.mxu0 %v424_v0  ;;  %860 = vmatpush.msra.mxu1 %v424_v0  ;;  %v422_v2 = vld [vmem:[#allocation9 + $0x48] sm:$0xff]  ;;  %v421_v3 = vld [vmem:[#allocation9 + $0x40] sm:$0xff]  ;;  %v420_v4 = vld [vmem:[#allocation9 + $0x38] sm:$0xff]  ;;  %s1661_s15 = sld [smem:[#allocation17_spill]] }
  0x4a   : > { %v419_v5 = vld [vmem:[#allocation9 + $0x30] sm:$0xff]  ;;  %v418_v6 = vld [vmem:[#allocation9 + $0x28] sm:$0xff]  ;;  %v417_v7 = vld [vmem:[#allocation9 + $0x20] sm:$0xff]  ;;  %s1662_s20 = sld [smem:[#allocation19_spill]] }
  0x4b   : > { %437 = vmatpush.msra.mxu0 %v423_v1  ;;  %861 = vmatpush.msra.mxu1 %v423_v1  ;;  %v416_v8 = vld [vmem:[#allocation9 + $0x18] sm:$0xff]  ;;  %v415_v9 = vld [vmem:[#allocation9 + $0x10] sm:$0xff]  ;;  %v414_v10 = vld [vmem:[#allocation9 + $0x8] sm:$0xff]  ;;  %s1663_s30 = sld [smem:[#allocation26_spill]] }
  0x4c   : > { %v413_v11 = vld [vmem:[#allocation9] sm:$0xff]  ;;  %v412_v13 = vld [vmem:[%s348_s28 + $0x8] sm:$0xff]  ;;  %s1664_s6 = sld [smem:[#allocation29_spill]] }
  0x4d   : > { %438 = vmatpush.msra.mxu0 %v422_v2  ;;  %862 = vmatpush.msra.mxu1 %v422_v2  ;;  %v411_v12 = vld [vmem:[%s348_s28] sm:$0xff]  ;;  %s1665_s4 = sld [smem:[#allocation18_spill]] }
  0x4e   : > { %s393_s3 = sand.u32 1, %s1660_s2  }
  0x4f   : > { %s1443_s11 = sshll.u32 %s393_s3, 4  ;;  %439 = vmatpush.msra.mxu0 %v421_v3  ;;  %863 = vmatpush.msra.mxu1 %v421_v3  ;;  %s841_s21 = sshll.u32 %s1661_s15, 1 }
  0x50   : > { %p397_p1 = scmp.lt.s32.totalorder %s1662_s20, 1  ;;  %p399_p4 = scmp.lt.s32.totalorder %s841_s21, 7 }
  0x51   : > { %440 = vmatpush.msra.mxu0 %v420_v4  ;;  %864 = vmatpush.msra.mxu1 %v420_v4  ;;  %s1463_s7 = scalar_lea.vmem [#allocation11], %s1443_s11 }
  0x52   : > { %s1709_s20 = smov (!%p397_p1, %s1662_s20), 1  ;;  %s1711_s21 = smov (!%p399_p4, %s841_s21), 7  ;;  %v1006_v16 = vld [vmem:[%s1664_s6] ss:$0 sm:$0xff] }
  0x53   : > { %441 = vmatpush.msra.mxu0 %v419_v5  ;;  %865 = vmatpush.msra.mxu1 %v419_v5  ;;  %s842_s22 = sshll.u32 %s1709_s20, 3  ;;  %p846_p11 = scmp.ne.s32.totalorder %s1665_s4, 0 }
  0x54   : > { %s402_s24 = sadd.s32 %s842_s22, %s1711_s21  ;;  %s1666_s8 = sld [smem:[#allocation17_spill]] (!%p846_p11) }
  0x55   : > { %442 = vmatpush.msra.mxu0 %v418_v6  ;;  %866 = vmatpush.msra.mxu1 %v418_v6  ;;  %s843_s25 = sshll.u32 %s402_s24, 3 }
  0x56   : > { %s404_s23 = scalar_lea.vmem %s1663_s30, %s843_s25 }
  0x57   : > { %443 = vmatpush.msra.mxu0 %v417_v7  ;;  %867 = vmatpush.msra.mxu1 %v417_v7  ;;  %v409_v14 = vld [vmem:[%s404_s23] sm:$0xff]  ;;  %v410_v15 = vld [vmem:[%s404_s23 + $0x8] sm:$0xff] }
  0x59   : > { %444 = vmatpush.msra.mxu0 %v416_v8  ;;  %868 = vmatpush.msra.mxu1 %v416_v8 }
  0x5a   : > { %p847_p2 = scmp.ne.s32.totalorder (!%p846_p11), %s1666_s8, 0 }
  0x5b   : > { %445 = vmatpush.msra.mxu0 %v415_v9  ;;  %869 = vmatpush.msra.mxu1 %v415_v9 }
  0x5d   : > { %446 = vmatpush.msra.mxu0 %v414_v10  ;;  %870 = vmatpush.msra.mxu1 %v414_v10 }
  0x5f   : > { %447 = vmatpush.msra.mxu0 %v413_v11  ;;  %871 = vmatpush.msra.mxu1 %v413_v11 }
  0x60   : > { %844 = vmatmul.msk.f32.vlgmr.msra.gmra.mxu0 %vm425_vm0, %v411_v12  ;;  %845 = vmatmul.msk.f32.vlgmr.msra.gmra.mxu1 %vm425_vm0, %v412_v13 }
  0xdc   : > { %466 = sbr.rel (%p846_p11) target bundleno = 252 (0xfc), region = 64 }
  0xdd   : > { %v449_v17 = vpop.f32.mrf.mxu0  ;;  %v452_v18 = vpop.f32.mrf.mxu1 }
  0xde   : > { %v455_v19 = vadd.f32 %v449_v17, %v409_v14  ;;  %v456_v20 = vadd.f32 %v452_v18, %v410_v15 }
  0xe0   : > { %v1458_v21 = vadd.f32 %v1006_v16, %v455_v19  ;;  %v1460_v22 = vadd.f32 %v1006_v16, %v456_v20 }
  0xe1   : > { %470 = sbr.rel (%p847_p2) target bundleno = 233 (0xe9), region = 68 }
  0xe6   : > { %v1226_v23 = vmov 0.0  }
  0xe7   : > { %471 = vst [vmem:[#allocation2] sm:$0x1] %v1226_v23 }
  0xe8   : > { %472 = vst [vmem:[#allocation3] sm:$0x1] %v1226_v23 }
  0xe9 PF: > { %v474_v24 = vadd.f32 %v1460_v22, %v1458_v21  ;;  %v484_v25 = vmul.f32 %v1458_v21, %v1458_v21  ;;  %v485_v26 = vmul.f32 %v1460_v22, %v1460_v22 }
  0xeb   : > { %v475_v27 = vrot.slane %v474_v24, 4  ;;  %v486_v28 = vadd.f32 %v485_v26, %v484_v25 }
  0xed   : > { %v476_v29 = vadd.f32 %v475_v27, %v474_v24  ;;  %v487_v30 = vrot.slane %v486_v28, 4 }
  0xee   : > { %v473_v37 = vld [vmem:[#allocation2] sm:$0x1] }
  0xef   : > { %v477_v31 = vrot.slane %v476_v29, 2  ;;  %v488_v32 = vadd.f32 %v487_v30, %v486_v28  ;;  %v483_v40 = vld [vmem:[#allocation3] sm:$0x1] }
  0xf1   : > { %v478_v33 = vadd.f32 %v477_v31, %v476_v29  ;;  %v489_v34 = vrot.slane %v488_v32, 2 }
  0xf3   : > { %v479_v35 = vrot.slane %v478_v33, 1  ;;  %v490_v36 = vadd.f32 %v489_v34, %v488_v32 }
  0xf5   : > { %v480_v38 = vadd.f32 %v479_v35, %v478_v33  ;;  %v491_v39 = vrot.slane %v490_v36, 1 }
  0xf7   : > { %v481_v41 = vadd.f32 %v480_v38, %v473_v37  ;;  %v492_v42 = vadd.f32 %v491_v39, %v490_v36 }
  0xf9   : > { %482 = vst [vmem:[#allocation2] sm:$0x1] %v481_v41  ;;  %v493_v43 = vadd.f32 %v492_v42, %v483_v40 }
  0xfb   : > { %494 = vst [vmem:[#allocation3] sm:$0x1] %v493_v43 }
  0xfc PF: > { %s1667_s27 = sld [smem:[#allocation18_spill]] }
 0x102   : > { %p848_p3 = scmp.ne.s32.totalorder %s1667_s27, 1 }
 0x103   : > { %s1668_s12 = sld [smem:[#allocation17_spill]] (!%p848_p3) }
 0x104   : > { %498 = sbr.rel (%p848_p3) target bundleno = 636 (0x27c), region = 72 }
 0x109   : > { %p849_p5 = scmp.ne.s32.totalorder %s1668_s12, 0 }
 0x10a   : > { %s1669_s11 = sld [smem:[#allocation32_spill]] (!%p849_p5) }
 0x10b   : > { %502 = sbr.rel (%p849_p5) target bundleno = 595 (0x253), region = 76  ;;  %s1671_s8 = sld [smem:[#allocation33_spill]] (!%p849_p5) }
 0x10c   : > { %s1672_s28 = sld [smem:[#allocation30_spill]] (!%p849_p5) }
 0x10d   : > { %s1673_s15 = sld [smem:[#allocation31_spill]] (!%p849_p5) }
 0x110   : > { %s1670_s20 = smov %s1669_s11  ;;  %v519_v44 = vld [vmem:[%s1669_s11 + $0x78] sm:$0xff]  ;;  %v503_v60 = vld [vmem:[#allocation2] sm:$0x1]  ;;  %v540_v61 = vld [vmem:[#allocation3] sm:$0x1]  ;;  %vm577_vm1 = vcmask 64512  }
 0x111   : > { %v518_v45 = vld [vmem:[%s1670_s20 + $0x70] sm:$0xff]  ;;  %520 = vmatpush.msra.mxu0 %v519_v44  ;;  %541 = vmatpush.msra.mxu1 %v519_v44  ;;  %v517_v46 = vld [vmem:[%s1670_s20 + $0x68] sm:$0xff]  ;;  %v516_v47 = vld [vmem:[%s1670_s20 + $0x60] sm:$0xff] }
 0x112   : > { %v515_v48 = vld [vmem:[%s1670_s20 + $0x58] sm:$0xff]  ;;  %v514_v49 = vld [vmem:[%s1670_s20 + $0x50] sm:$0xff]  ;;  %v513_v50 = vld [vmem:[%s1670_s20 + $0x48] sm:$0xff] }
 0x113   : > { %521 = vmatpush.msra.mxu0 %v518_v45  ;;  %542 = vmatpush.msra.mxu1 %v518_v45  ;;  %v512_v51 = vld [vmem:[%s1670_s20 + $0x40] sm:$0xff]  ;;  %v511_v52 = vld [vmem:[%s1670_s20 + $0x38] sm:$0xff]  ;;  %v510_v53 = vld [vmem:[%s1670_s20 + $0x30] sm:$0xff] }
 0x114   : > { %v509_v54 = vld [vmem:[%s1670_s20 + $0x28] sm:$0xff]  ;;  %v508_v55 = vld [vmem:[%s1670_s20 + $0x20] sm:$0xff]  ;;  %v507_v56 = vld [vmem:[%s1670_s20 + $0x18] sm:$0xff] }
 0x115   : > { %522 = vmatpush.msra.mxu0 %v517_v46  ;;  %543 = vmatpush.msra.mxu1 %v517_v46  ;;  %v506_v57 = vld [vmem:[%s1670_s20 + $0x10] sm:$0xff]  ;;  %v505_v58 = vld [vmem:[%s1670_s20 + $0x8] sm:$0xff]  ;;  %v504_v59 = vld [vmem:[%s1670_s20] sm:$0xff] }
 0x116   : > { %v576_v62 = vld [vmem:[%s1671_s8] sm:$0xff] }
 0x117   : > { %523 = vmatpush.msra.mxu0 %v516_v47  ;;  %544 = vmatpush.msra.mxu1 %v516_v47  ;;  %v624_v13 = vld [vmem:[%s1672_s28] sm:$0x1] }
 0x118   : > { %596 = vmatpush.msra.mxu2 %v576_v62  ;;  %619 = vmatpush.msra.mxu3 %v576_v62  ;;  %v627_v17 = vld [vmem:[%s1673_s15] sm:$0x1] }
 0x119   : > { %524 = vmatpush.msra.mxu0 %v515_v48  ;;  %545 = vmatpush.msra.mxu1 %v515_v48 }
 0x11b   : > { %525 = vmatpush.msra.mxu0 %v514_v49  ;;  %546 = vmatpush.msra.mxu1 %v514_v49 }
 0x11d   : > { %526 = vmatpush.msra.mxu0 %v513_v50  ;;  %547 = vmatpush.msra.mxu1 %v513_v50 }
 0x11f   : > { %527 = vmatpush.msra.mxu0 %v512_v51  ;;  %548 = vmatpush.msra.mxu1 %v512_v51 }
 0x121   : > { %528 = vmatpush.msra.mxu0 %v511_v52  ;;  %549 = vmatpush.msra.mxu1 %v511_v52 }
 0x123   : > { %529 = vmatpush.msra.mxu0 %v510_v53  ;;  %550 = vmatpush.msra.mxu1 %v510_v53 }
 0x125   : > { %530 = vmatpush.msra.mxu0 %v509_v54  ;;  %551 = vmatpush.msra.mxu1 %v509_v54 }
 0x127   : > { %531 = vmatpush.msra.mxu0 %v508_v55  ;;  %552 = vmatpush.msra.mxu1 %v508_v55 }
 0x129   : > { %532 = vmatpush.msra.mxu0 %v507_v56  ;;  %553 = vmatpush.msra.mxu1 %v507_v56 }
 0x12b   : > { %533 = vmatpush.msra.mxu0 %v506_v57  ;;  %554 = vmatpush.msra.mxu1 %v506_v57 }
 0x12d   : > { %534 = vmatpush.msra.mxu0 %v505_v58  ;;  %555 = vmatpush.msra.mxu1 %v505_v58 }
 0x12f   : > { %535 = vmatpush.msra.mxu0 %v504_v59  ;;  %556 = vmatpush.msra.mxu1 %v504_v59 }
 0x130   : > { %536 = vmatmul.f32.vlgmr.msra.gmra.mxu0 %v503_v60  ;;  %557 = vmatmul.f32.vlgmr.msra.gmra.mxu1 %v540_v61 }
 0x1ad   : > { %v537_v63 = vpop.f32.mrf.mxu0  ;;  %v558_v0 = vpop.f32.mrf.mxu1 }
 0x1ae   : > { %v561_v1 = vmul.f32 0.0009765625, %v537_v63  ;;  %v562_v2 = vmul.f32 0.0009765625, %v558_v0 }
 0x1b0   : > { %v563_v3 = vmul.f32 %v561_v1, %v561_v1  ;;  %850 = vmatmul.msk.f32.vlgmr.msra.gmra.mxu2 %vm577_vm1, %v561_v1 }
 0x1b2   : > { %v564_v4 = vsub.f32 %v562_v2, %v563_v3 }
 0x1b4   : > { %v565_v5 = vadd.f32 1e-05, %v564_v4 }
 0x1b6   : > { %1007 = vrsqrt.f32 %v565_v5  ;;  %vm572_vm3 = vweird.f32 %v565_v5 }
 0x1bc   : > { %v1008_v6 = vpop.eup %1007 }
 0x1bd   : > { %v567_v7 = vmul.f32 %v1008_v6, %v565_v5  ;;  %vm573_vm2 = vweird.f32 %v1008_v6 }
 0x1be   : > { %vm574_vm4 = vmor %vm572_vm3, %vm573_vm2 }
 0x1bf   : > { %v568_v8 = vmul.f32 %v1008_v6, %v567_v7 }
 0x1c1   : > { %v569_v9 = vmul.f32 0.5, %v568_v8 }
 0x1c3   : > { %v570_v10 = vsub.f32 1.5, %v569_v9 }
 0x1c5   : > { %v571_v11 = vmul.f32 %v1008_v6, %v570_v10 }
 0x1c7   : > { %v575_v12 = vsel %vm574_vm4, %v1008_v6, %v571_v11 }
 0x1c8   : > { %851 = vmatmul.msk.f32.vlgmr.msra.gmra.mxu3 %vm577_vm1, %v575_v12 }
 0x233   : > { %v598_v16 = vpop.f32.mrf.mxu2 }
 0x24b   : > { %v621_v14 = vpop.f32.mrf.mxu3 }
 0x24c   : > { %v625_v15 = vmul.f32 %v624_v13, %v621_v14 }
 0x24e   : > { %626 = vst [vmem:[#allocation4] sm:$0x1] %v625_v15  ;;  %v628_v18 = vmul.f32 %v625_v15, %v598_v16 }
 0x250   : > { %v629_v19 = vsub.f32 %v627_v17, %v628_v18 }
 0x252   : > { %630 = vst [vmem:[#allocation5] sm:$0x1] %v629_v19 }
 0x253 PF:  {}
 0x255   : > { %v1009_v20 = vld [vmem:[#allocation4] ss:$0 sm:$0xff] }
 0x256   : > { %v635_v24 = vmul.f32 %v1009_v20, %v1458_v21  ;;  %v636_v25 = vmul.f32 %v1009_v20, %v1460_v22 }
 0x259   : > { %v1010_v23 = vld [vmem:[#allocation5] ss:$0 sm:$0xff] }
 0x25a   : > { %v641_v26 = vadd.f32 %v1010_v23, %v635_v24  ;;  %v642_v27 = vadd.f32 %v1010_v23, %v636_v25 }
 0x25c   : > { %v852_v28 = vmul.f32 -1.442695, %v641_v26  ;;  %v853_v29 = vmul.f32 -1.442695, %v642_v27 }
 0x25e   : > { %1011 = vpow2.f32 %v852_v28 }
 0x25f   : > { %1013 = vpow2.f32 %v853_v29 }
 0x264   : > { %v1012_v30 = vpop.eup %1011 }
 0x265   : > { %v1014_v31 = vpop.eup %1013  ;;  %v649_v32 = vadd.f32 1.0, %v1012_v30 }
 0x266   : > { %v650_v33 = vadd.f32 1.0, %v1014_v31 }
 0x267   : > { %1015 = vrcp.f32 %v649_v32  ;;  %vm656_vm5 = vweird.f32 %v649_v32  ;;  %v662_v37 = vand.u32 2147483648, %v649_v32  ;;  %v660_v22 = vand.u32 2147483647, %v649_v32 }
 0x268   : > { %1017 = vrcp.f32 %v650_v33  ;;  %v677_v39 = vand.u32 2147483648, %v650_v33  ;;  %vm671_vm7 = vweird.f32 %v650_v33  ;;  %v675_v41 = vand.u32 2147483647, %v650_v33 }
 0x269   : > { %v663_v43 = vor.u32 1.1754944e-38, %v662_v37  ;;  %vm661_vm10 = vcmp.eq.f32.partialorder %v660_v22, 8.507059e+37 }
 0x26a   : > { %v678_v46 = vor.u32 1.1754944e-38, %v677_v39  ;;  %vm676_vm12 = vcmp.eq.f32.partialorder %v675_v41, 8.507059e+37 }
 0x26d   : > { %v1016_v34 = vpop.eup %1015 }
 0x26e   : > { %v1018_v35 = vpop.eup %1017  ;;  %v652_v36 = vmul.f32 %v1016_v34, %v649_v32  ;;  %vm657_vm6 = vweird.f32 %v1016_v34 }
 0x26f   : > { %v667_v21 = vmul.f32 %v1018_v35, %v650_v33  ;;  %vm672_vm8 = vweird.f32 %v1018_v35  ;;  %vm658_vm9 = vmor %vm656_vm5, %vm657_vm6 }
 0x270   : > { %v653_v38 = vsub.f32 1.0, %v652_v36  ;;  %vm673_vm11 = vmor %vm671_vm7, %vm672_vm8 }
 0x271   : > { %v668_v40 = vsub.f32 1.0, %v667_v21 }
 0x272   : > { %v654_v42 = vmul.f32 %v1016_v34, %v653_v38 }
 0x273   : > { %v669_v44 = vmul.f32 %v1018_v35, %v668_v40 }
 0x274   : > { %v655_v45 = vadd.f32 %v1016_v34, %v654_v42 }
 0x275   : > { %v670_v47 = vadd.f32 %v1018_v35, %v669_v44 }
 0x276   : > { %v659_v48 = vsel %vm658_vm9, %v1016_v34, %v655_v45 }
 0x277   : > { %v664_v49 = vsel %vm661_vm10, %v663_v43, %v659_v48  ;;  %v674_v50 = vsel %vm673_vm11, %v1018_v35, %v670_v47 }
 0x278   : > { %v681_v51 = vmul.f32 %v664_v49, %v641_v26  ;;  %v679_v52 = vsel %vm676_vm12, %v678_v46, %v674_v50 }
 0x279   : > { %v682_v53 = vmul.f32 %v679_v52, %v642_v27 }
 0x27a   : > { %683 = vst [vmem:[%s1463_s7] sm:$0xff] %v681_v51 }
 0x27b   : > { %684 = vst [vmem:[%s1463_s7 + $0x8] sm:$0xff] %v682_v53 }
 0x27c PF: > { %s1674_s21 = sld [smem:[#allocation18_spill]]  ;;  %s701_s23 = sshll.u32 %s1463_s7, 4  ;;  %s702_s23 = int_to_ptr.vmem [resolvable:$true] %s701_s23 }
 0x27d   : > { %s1675_s22 = sld [smem:[#allocation17_spill]]  ;;  %s686_s11 = scalar_lea.sflag [#allocation8], %s393_s3 }
 0x27e   : > { %s1676_s24 = sld [smem:[#allocation19_spill]] }
 0x27f   : > { %s1679_s27 = sld [smem:[#allocation34_spill]] }
 0x283   : > { %s693_s18 = smul.u32 %s1675_s22, %s1674_s21 }
 0x284   : > { %s856_s30 = sshll.u32 %s1676_s24, 3 }
 0x285   : > { %s855_s19 = sshll.u32 %s693_s18, 1  ;;  %s1680_s2 = smov %s1679_s27 }
 0x286   : > { %s698_s5 = sadd.s32 %s856_s30, %s855_s19  ;;  %s1099_s22 = scalar_lea.hbm %s1680_s2, 128 }
 0x287   : > { %s857_s6 = sshll.u32 %s698_s5, 3 }
 0x288   : > { %s700_s12 = scalar_lea.hbm %s1679_s27, %s857_s6 }
 0x289   : > { %s703_s28 = sshll.u32 %s700_s12, 4  ;;  %s704_s28 = int_to_ptr.hbm [resolvable:$true] %s703_s28 }
 0x28a   : > { %s1093_s15 = sshra.s32 %s704_s28, 4  ;;  %s1094_s15 = int_to_ptr.hbm [resolvable:$true] %s1093_s15 }
 0x28b   : > { %s1095_s1 = scalar_lea.hbm %s1094_s15, 16  ;;  %p1100_p12 = scmp.lt.s32.totalorder %s1094_s15, %s1680_s2 }
 0x28c   : > { %p1096_p7 = scmp.ne.s32.totalorder %s1094_s15, %s1095_s1  ;;  %p1101_p13 = scmp.lt.s32.totalorder %s1099_s22, %s1095_s1 }
 0x28e   : > { %p1097_p8 = pnand %p1096_p7, %p1354_p6  ;;  %p1102_p0 = por %p1101_p13, %p1100_p12 }
 0x290   : > { %p1098_p9 = pneg %p1097_p8 }
 0x292   : > { %p1103_p1 = pnand %p1102_p0, %p1098_p9 }
 0x294   : > { %1106 = shalt.err (!%p1103_p1)
}
 0x295   : > { %s1227_s3 = smov 128   ;;  %s1228_s25 = smov 8  }
 0x296   : > { %878 = dma.vmem_to_hbm [thread:$0]  (%p1354_p6), %s702_s23, 256, %s704_s28, %s686_s11, %s1227_s3, %s1227_s3, %s1228_s25  }
 0x297 PF: > { %s1681_s30 = sld [smem:[#allocation15_spill]]  ;;  %p895_p4 = scmp.ge.s32.totalorder %s1221_s17, 2 }
 0x299   : > { %p889_p11 = pnand %p895_p4, %p1360_p10 }
 0x29b   : > { %p890_p2 = pneg %p889_p11 }
 0x29d   : > { %s718_s5 = sand.u32 1, %s1681_s30  }
 0x29e   : > { %s719_s6 = scalar_lea.sflag [#allocation8], %s718_s5 }
 0x29f   : > { %1168 = dma.done.wait (%p890_p2), %s719_s6, 256  }
 0x2a0   : > { %1170 = vsyncadd (%p890_p2), %s719_s6, 4294967040  ;;  %s25_s17 = sadd.s32 1, %s1221_s17   ;;  %s1684_s27 = sld [smem:[#allocation16_spill]] }
 0x2a1   : > { %p1562_p3 = scmp.ge.s32.totalorder %s25_s17, 18   ;;  %s1685_s12 = sld [smem:[#allocation20_spill]] }
 0x2a2   : > { %s1686_s26 = sld [smem:[#allocation23_spill]]  ;;  %s1689_s28 = smov %s1181_s29 }
 0x2a3   : > { %s1687_s15 = sld [smem:[#allocation24_spill]]  ;;  %s1690_s29 = smov %s1414_s13 }
 0x2a4   : > { %s1688_s23 = sld [smem:[#allocation25_spill]]  ;;  %s1691_s30 = smov %s1189_s9 }
 0x2a5   : > { %s1692_s9 = smov %s1193_s10  ;;  %s1693_s10 = smov %s1411_s0 }
 0x2a6   : > { %s1694_s11 = smov %s1209_s14  ;;  %s1695_s13 = smov %s1217_s16 }
 0x2a7   :  { %24 = sbr.rel (!%p1562_p3) target bundleno = 21 (0x15), region = 120 }
 0x2a8   : > { %s1696_s14 = smov %s1686_s26 }
 0x2aa   : > { %s1697_s16 = smov %s1688_s23 }
 0x2ac   :  { %725 = vsyncpa [#allocation7], 1 }
 0x2ad   :  { %727 = vsyncpa [#allocation7 + $0x1], 1 }
 0x2ae   :  { %728 = vsyncpa [#allocation10], 1 }
 0x2af   :  { %729 = vsyncpa [#allocation8], 1 }
 0x2b0   :  { %731 = vsyncpa [#allocation8 + $0x1], 1 }

</bundles_post_ra>
